<compile_context>
chip_gen: v5e
topology: v5e:2x2
jax: 0.10.0
libtpu: 0.0.40
codegen_flags: <defaults>
</compile_context>

<pallas_src>
import functools

import jax
import jax.numpy as jnp
from jax.experimental import pallas as pl
from jax.experimental.pallas import tpu as pltpu


def poly_loss_kernel(w_ref, packed_ref, out_ref, *, epsilon):
    # w_ref:      (2,)   f32 in SMEM (scalar-prefetched class weights)
    # packed_ref: (3, N) predicted.dtype in VMEM:
    #             row 0 = logits[:, 0], row 1 = logits[:, 1], row 2 = labels
    # out_ref:    (1, 1) f32 in VMEM (mean poly-1 loss)
    packed = packed_ref[...].astype(jnp.float32)         # widen in-kernel (free VPU)
    n = packed.shape[1]

    l0 = packed[0:1, :]                                   # (1, N) class-0 logits
    l1 = packed[1:2, :]                                    # (1, N) class-1 logits
    lab = packed[2:3, :]                                   # (1, N) labels as f32 (0.0/1.0)

    w0 = w_ref[0]                                          # scalar SMEM reads
    w1 = w_ref[1]

    # Unrolled C=2 softmax: everything elementwise on lane-dense (1, N) rows.
    m = jnp.maximum(l0, l1)                                # stable shift
    e0 = jnp.exp(l0 - m)
    e1 = jnp.exp(l1 - m)
    s = e0 + e1
    log_s = jnp.log(s)

    is1 = lab == 1.0
    e_true = jnp.where(is1, e1, e0)                        # exp(logit_true - m)
    l_true = jnp.where(is1, l1, l0)                        # logit of the true class
    w_true = jnp.where(is1, w1, w0)                        # weight[y_i]

    pt = e_true / s                                        # softmax prob of true class
    logp_true = (l_true - m) - log_s                       # log_softmax[i, y_i]
    ce = -w_true * logp_true                               # weighted, unreduced CE
    poly1 = ce + epsilon * (1.0 - pt)                      # (1, N)

    # torch.mean over the N per-sample losses: one lane-reduce + scale.
    out_ref[...] = jnp.sum(poly1, keepdims=True) * (1.0 / n)


def poly_loss(predicted, labels, weight_loss, epsilon=1.0):
    n, c = predicted.shape
    assert c == 2, "PolyLoss in MCA.py is hard-coded to 2 classes"

    # One lane-dense (3, N) buffer: [logit0 ; logit1 ; label].  Labels in {0,1}
    # are exactly representable in predicted.dtype (bf16/f32), so no precision
    # is lost and only a single input DMA is issued by the kernel.
    packed = jnp.concatenate(
        [predicted.T, labels.astype(predicted.dtype).reshape(1, n)], axis=0)
    weight1d = weight_loss.astype(jnp.float32).reshape(c)

    kernel = functools.partial(poly_loss_kernel, epsilon=float(epsilon))
    out = pl.pallas_call(
        kernel,
        out_shape=jax.ShapeDtypeStruct((1, 1), jnp.float32),
        grid_spec=pltpu.PrefetchScalarGridSpec(
            num_scalar_prefetch=1,            # weight_loss -> SMEM
            grid=(1,),
            in_specs=[
                pl.BlockSpec((3, n), lambda i, w: (0, 0)),   # packed logits+labels
            ],
            out_specs=pl.BlockSpec((1, 1), lambda i, w: (0, 0)),
        ),
        compiler_params=pltpu.CompilerParams(
            dimension_semantics=("arbitrary",)),
        cost_estimate=pl.CostEstimate(
            flops=10 * n, transcendentals=2 * n, bytes_accessed=12 * n + 12),
    )(weight1d, packed)
    return out[0, 0]


def poly_loss_ref(predicted, labels, weight_loss, epsilon=1.0):
    # Pure-JAX reference mirroring the PyTorch forward.
    predicted = predicted.astype(jnp.float32)
    one_hot = jax.nn.one_hot(labels, predicted.shape[1], dtype=jnp.float32)
    pt = jnp.sum(one_hot * jax.nn.softmax(predicted, axis=1), axis=-1)
    logp = jax.nn.log_softmax(predicted, axis=1)
    w_i = weight_loss.astype(jnp.float32)[labels]
    ce = -w_i * jnp.sum(one_hot * logp, axis=-1)
    return jnp.mean(ce + epsilon * (1.0 - pt))


if __name__ == "__main__":
    # Shapes implied by the module: predicted (16, 2), labels (16,), weight (2,).
    key = jax.random.PRNGKey(0)
    k_pred, k_lab = jax.random.split(key)
    predicted = jax.random.normal(k_pred, (16, 2), dtype=jnp.float32)
    labels = jax.random.randint(k_lab, (16,), 0, 2, dtype=jnp.int32)
    weight_loss = jnp.array([1.0, 2.0], dtype=jnp.float32)  # CE class weights
    epsilon = 1.0

    out = jax.block_until_ready(poly_loss(predicted, labels, weight_loss, epsilon))
    ref = poly_loss_ref(predicted, labels, weight_loss, epsilon)
    assert jnp.allclose(out, ref, rtol=1e-5, atol=1e-5), (out, ref)

    print("KERNEL_OK")
</pallas_src>

<mosaic_0001>
module attributes {stable_mosaic.version = 11 : i64} {
  func.func @poly_loss_kernel(%arg0: i32, %arg1: memref<2xf32, #tpu.memory_space<smem>>, %arg2: memref<3x16xf32, #tpu.memory_space<vmem>>, %arg3: memref<1x1xf32, #tpu.memory_space<vmem>>) attributes {dimension_semantics = [#tpu.dimension_semantics<arbitrary>], iteration_bounds = array<i64: 1>, scalar_prefetch = 1 : i64, scratch_operands = 0 : i64, tpu.core_type = #tpu.core_type<tc>, window_params = [{pipeline_mode = #tpu.pipeline_mode<synchronous>, transform_indices = @transform_0, window_bounds = array<i64: 3, 16>}, {pipeline_mode = #tpu.pipeline_mode<synchronous>, transform_indices = @transform_1, window_bounds = array<i64: 1, 1>}]} {
    %c0 = arith.constant 0 : index
    %c0_0 = arith.constant 0 : index
    %0 = vector.load %arg2[%c0, %c0_0] : memref<3x16xf32, #tpu.memory_space<vmem>>, vector<3x16xf32>
    %1 = vector.extract_strided_slice %0 {offsets = [0, 0], sizes = [1, 16], strides = [1, 1]} : vector<3x16xf32> to vector<1x16xf32>
    %2 = vector.extract_strided_slice %0 {offsets = [1, 0], sizes = [1, 16], strides = [1, 1]} : vector<3x16xf32> to vector<1x16xf32>
    %3 = vector.extract_strided_slice %0 {offsets = [2, 0], sizes = [1, 16], strides = [1, 1]} : vector<3x16xf32> to vector<1x16xf32>
    %c0_1 = arith.constant 0 : index
    %4 = memref.load %arg1[%c0_1] : memref<2xf32, #tpu.memory_space<smem>>
    %c1 = arith.constant 1 : index
    %5 = memref.load %arg1[%c1] : memref<2xf32, #tpu.memory_space<smem>>
    %6 = arith.maximumf %1, %2 : vector<1x16xf32>
    %7 = arith.subf %1, %6 : vector<1x16xf32>
    %8 = math.exp %7 : vector<1x16xf32>
    %9 = arith.subf %2, %6 : vector<1x16xf32>
    %10 = math.exp %9 : vector<1x16xf32>
    %11 = arith.addf %8, %10 : vector<1x16xf32>
    %12 = math.log %11 : vector<1x16xf32>
    %cst = arith.constant 1.000000e+00 : f32
    %13 = vector.broadcast %cst : f32 to vector<1x16xf32>
    %14 = arith.cmpf oeq, %3, %13 : vector<1x16xf32>
    %15 = arith.select %14, %10, %8 : vector<1x16xi1>, vector<1x16xf32>
    %16 = arith.select %14, %2, %1 : vector<1x16xi1>, vector<1x16xf32>
    %17 = vector.broadcast %5 : f32 to vector<1x16xf32>
    %18 = vector.broadcast %4 : f32 to vector<1x16xf32>
    %19 = arith.select %14, %17, %18 : vector<1x16xi1>, vector<1x16xf32>
    %20 = arith.divf %15, %11 : vector<1x16xf32>
    %21 = arith.subf %16, %6 : vector<1x16xf32>
    %22 = arith.subf %21, %12 : vector<1x16xf32>
    %cst_2 = arith.constant 0.000000e+00 : f32
    %23 = vector.broadcast %cst_2 : f32 to vector<1x16xf32>
    %24 = arith.subf %23, %19 : vector<1x16xf32>
    %25 = arith.mulf %24, %22 : vector<1x16xf32>
    %cst_3 = arith.constant 1.000000e+00 : f32
    %26 = vector.broadcast %cst_3 : f32 to vector<1x16xf32>
    %27 = arith.subf %26, %20 : vector<1x16xf32>
    %cst_4 = arith.constant 1.000000e+00 : f32
    %28 = vector.broadcast %cst_4 : f32 to vector<1x16xf32>
    %29 = arith.mulf %28, %27 : vector<1x16xf32>
    %30 = arith.addf %25, %29 : vector<1x16xf32>
    %31 = vector.shape_cast %30 : vector<1x16xf32> to vector<1x1x16xf32>
    %cst_5 = arith.constant dense<0.000000e+00> : vector<1xf32>
    %32 = vector.multi_reduction <add>, %31, %cst_5 [1, 2] : vector<1x1x16xf32> to vector<1xf32>
    %33 = vector.shape_cast %32 : vector<1xf32> to vector<1x1x1xf32>
    %34 = vector.extract %33[0, 0, 0] : f32 from vector<1x1x1xf32>
    %35 = vector.broadcast %34 : f32 to vector<1x1xf32>
    %cst_6 = arith.constant 6.250000e-02 : f32
    %36 = vector.broadcast %cst_6 : f32 to vector<1x1xf32>
    %37 = arith.mulf %35, %36 : vector<1x1xf32>
    %c0_7 = arith.constant 0 : index
    %c0_8 = arith.constant 0 : index
    %38 = vector.load %arg3[%c0_7, %c0_8] : memref<1x1xf32, #tpu.memory_space<vmem>>, vector<1x1xf32>
    tpu.vector_store %arg3[%c0_7, %c0_8], %37 {strides = array<i32>} : memref<1x1xf32, #tpu.memory_space<vmem>>, vector<1x1xf32>,
    return
  }
  func.func @transform_0(%arg0: i32, %arg1: memref<2xf32, #tpu.memory_space<smem>>) -> (i32, i32) {
    %c0_i32 = arith.constant 0 : i32
    %c0_i32_0 = arith.constant 0 : i32
    %c0_i32_1 = arith.constant 0 : i32
    return %c0_i32, %c0_i32_0 : i32, i32
  }
  func.func @transform_1(%arg0: i32, %arg1: memref<2xf32, #tpu.memory_space<smem>>) -> (i32, i32) {
    %c0_i32 = arith.constant 0 : i32
    %c0_i32_0 = arith.constant 0 : i32
    %c0_i32_1 = arith.constant 0 : i32
    return %c0_i32, %c0_i32_0 : i32, i32
  }
}

</mosaic_0001>

<bundles_post_ra>
// kernel: tpu_custom_call.1
= control target key start
LH: loop header
LB: loop body
LE: loop exit
PB: predicated region body
PF: predicated region fallthrough
CT: control target
= control target key end

     0   :  { %s213_s12 = smov [#allocation3]   ;;  %s243_s0 = inlined_call_operand.hbm [shape: f32[2], index: 0, kind: input, shape index: {}]   ;;  %s244_s1 = inlined_call_operand.hbm [shape: f32[3,16], index: 1, kind: input, shape index: {}]   ;;  %s245_s2 = inlined_call_operand.hbm [shape: f32[1,1], index: 2, kind: output, shape index: {}]  }
   0x1   :  { %s8_s11 = sshll.u32 %s243_s0, 4  ;;  %s9_s11 = int_to_ptr.hbm [resolvable:$true] %s8_s11 }
   0x2   :  { %11 = dma.hbm_to_smem %s9_s11, 16, %s213_s12, [#allocation2] }
   0x3   :  { %207 = dma.done.wait [#allocation2], 16 }
   0x4   :  { %208 = vsyncadd [#allocation2], 4294967280 }
   0x5   :  { %14 = sfence }
   0x6   :  { %15 = vsyncpa [#allocation5], 0 }
   0x7   :  { %16 = vsyncpa [#allocation6], 0  ;;  %s22_s15 = sshll.u32 %s244_s1, 4  ;;  %s214_s16 = smov [#allocation4]   ;;  %s23_s15 = int_to_ptr.hbm [resolvable:$true] %s22_s15 }
   0x8   :  { %s24_s17 = sshll.u32 %s214_s16, 4  ;;  %s25_s17 = int_to_ptr.vmem [resolvable:$true] %s24_s17 }
   0x9   :  { %27 = dma.hbm_to_vmem [thread:$0]  %s23_s15, 64, %s25_s17, [#allocation5]  }
   0xa   :  { %209 = dma.done.wait [#allocation5], 64  }
   0xb   :  { %210 = vsyncadd [#allocation5], 4294967232  ;;  %v32_v0 = vld [vmem:[#allocation4] sm:$0x7]  ;;  %s33_s0 = sld [smem:[#allocation3]]  ;;  %vm101_vm5 = vcmask 122880  }
   0xc   :  { %v36_v1 = vrot.slane %v32_v0, 1  ;;  %s133_s1 = sld [smem:[#allocation3 + $0x1]]  ;;  %v61_v13 = vrot.slane %v32_v0, 7  ;;  %v63_v14 = vrot.slane %v32_v0, 6  ;;  %vm54_vm0 = vcmp.eq.f32.partialorder %v32_v0, 1.0  ;;  %s215_s18 = smov [#allocation7]  }
   0xd   :  { %s121_s19 = sshll.u32 %s215_s18, 4  ;;  %s123_s22 = sshll.u32 %s245_s2, 4  ;;  %vm114_vm6 = vcmask 0   ;;  %s122_s19 = int_to_ptr.vmem [resolvable:$true] %s121_s19  ;;  %s124_s22 = int_to_ptr.hbm [resolvable:$true] %s123_s22 }
   0xe   :  { %v38_v2 = vmax.f32 %v32_v0, %v36_v1  ;;  %v65_v18 = vsel %vm54_vm0, %v61_v13, %v63_v14 }
  0x10   :  { %v39_v3 = vsub.f32 %v32_v0, %v38_v2  ;;  %v43_v4 = vrot.slane %v38_v2, 7  ;;  %v87_v16 = vrot.slane %v38_v2, 6 }
  0x11   :  { %v67_v21 = vstv %s33_s0 }
  0x12   :  { %v40_v5 = vmul.f32 1.442695, %v39_v3  ;;  %v45_v6 = vsub.f32 %v32_v0, %v43_v4  ;;  %v66_v20 = vstv %s133_s1  ;;  %v89_v24 = vsub.f32 %v65_v18, %v87_v16 }
  0x13   :  { %v68_v30 = vsel %vm54_vm0, %v66_v20, %v67_v21 }
  0x14   :  { %v46_v7 = vmul.f32 1.442695, %v45_v6  ;;  %139 = vpow2.f32 %v40_v5  ;;  %v94_v35 = vsub.f32 0.0, %v68_v30 }
  0x16   :  { %141 = vpow2.f32 %v46_v7 }
  0x1a   :  { %v140_v8 = vpop.eup %139 }
  0x1b   :  { %v58_v29 = vrot.slane %v140_v8, 6 }
  0x1c   :  { %v142_v9 = vpop.eup %141 }
  0x1d   :  { %v49_v10 = vrot.slane %v142_v9, 1  ;;  %v55_v28 = vrot.slane %v142_v9, 7 }
  0x1f   :  { %v51_v11 = vadd.f32 %v140_v8, %v49_v10  ;;  %v60_v36 = vsel %vm54_vm0, %v55_v28, %v58_v29 }
  0x21   :  { %143 = vlog2.f32 %v51_v11  ;;  %v70_v12 = vrot.slane %v51_v11, 6 }
  0x23   :  { %145 = vrcp.f32 %v70_v12  ;;  %vm77_vm1 = vweird.f32 %v70_v12  ;;  %v83_v23 = vand.u32 2147483648, %v70_v12  ;;  %v81_v26 = vand.u32 2147483647, %v70_v12 }
  0x25   :  { %v84_v32 = vor.u32 1.1754944e-38, %v83_v23  ;;  %vm82_vm4 = vcmp.eq.f32.partialorder %v81_v26, 8.507059e+37 }
  0x27   :  { %v144_v15 = vpop.eup %143 }
  0x28   :  { %v53_v17 = vmul.f32 0.6931472, %v144_v15 }
  0x29   :  { %v146_v19 = vpop.eup %145 }
  0x2a   :  { %v73_v22 = vmul.f32 %v146_v19, %v70_v12  ;;  %vm78_vm2 = vweird.f32 %v146_v19  ;;  %v91_v27 = vrot.slane %v53_v17, 6 }
  0x2b   :  { %vm79_vm3 = vmor %vm77_vm1, %vm78_vm2 }
  0x2c   :  { %v74_v25 = vsub.f32 1.0, %v73_v22  ;;  %v93_v34 = vsub.f32 %v89_v24, %v91_v27 }
  0x2e   :  { %v75_v31 = vmul.f32 %v146_v19, %v74_v25  ;;  %v95_v40 = vmul.f32 %v94_v35, %v93_v34 }
  0x30   :  { %v76_v33 = vadd.f32 %v146_v19, %v75_v31 }
  0x32   :  { %v80_v37 = vsel %vm79_vm3, %v146_v19, %v76_v33 }
  0x33   :  { %v85_v38 = vsel %vm82_vm4, %v84_v32, %v80_v37 }
  0x34   :  { %v86_v39 = vmul.f32 %v85_v38, %v60_v36 }
  0x36   :  { %v96_v41 = vsub.f32 1.0, %v86_v39 }
  0x38   :  { %v97_v42 = vadd.f32 %v96_v41, %v95_v40 }
  0x3a   :  { %v99_v43 = vrot.slane %v97_v42, 2 }
  0x3c   :  { %v102_v44 = vsel %vm101_vm5, %v99_v43, 0.0 }
  0x3d   :  { %103 = vadd.xlane.f32.xlu0 %v102_v44 }
  0xb0   :  { %v104_v45 = vpop.xlane.xlu0 %103 }
  0xb1   :  { %v105_v46 = vrot.slane %v104_v45, 4 }
  0xb3   :  { %v106_v47 = vadd.f32 %v105_v46, %v104_v45 }
  0xb5   :  { %v107_v48 = vrot.slane %v106_v47, 2 }
  0xb7   :  { %v108_v49 = vadd.f32 %v107_v48, %v106_v47 }
  0xb9   :  { %v109_v50 = vrot.slane %v108_v49, 1 }
  0xbb   :  { %v110_v51 = vadd.f32 %v109_v50, %v108_v49 }
  0xbd   :  { %134 = vpush %v110_v51 }
  0xee   :  { %s135_s23 = spop %134 }
  0xef   :  { %v112_v52 = vstv %s135_s23 }
  0xf0   :  { %v113_v53 = vmul.f32 0.0625, %v112_v52 }
  0xf2   :  { %115 = vst.msk [vmem:[#allocation7] sm:$0x1] %vm114_vm6, %v113_v53 }
  0xf3   :  { %126 = dma.vmem_to_hbm [thread:$0]  %s122_s19, 16, %s124_s22, [#allocation6]  }
  0xf4   :  { %211 = dma.done.wait [#allocation6], 16  }
  0xf5   :  { %212 = vsyncadd [#allocation6], 4294967280 }
  0xf6   :  { %131 = vsyncpa [#allocation5], 1 }
  0xf7   :  { %132 = vsyncpa [#allocation6], 1 }

</bundles_post_ra>
